<compile_context>
chip_gen: v7x
topology: tpu7x:2x2x1
jax: 0.10.0
libtpu: 0.0.40
codegen_flags: <defaults>
</compile_context>

<pallas_src>
import functools
import math

import jax
import jax.numpy as jnp
from jax.experimental import pallas as pl
from jax.experimental.pallas import tpu as pltpu


def _round_up(x, m):
    return ((x + m - 1) // m) * m


def _pack_offsets(T, In, H, O, L):
    """Row offsets of each section inside the single packed weight operand."""
    LH = L * H
    in_pad = _round_up(In, 8)
    off_wb = 0                       # (LH, LH)   wavefront block weight
    off_wih0 = off_wb + LH           # (In, H)    layer-0 input projection
    off_bias = off_wih0 + in_pad     # row 0: [b0|b1|...]; row 1: tiled b_out
    off_wout = off_bias + 8          # (T*H, T*O) block-diag reward weight
    rows = off_wout + T * H
    width = max(LH, H, T * O)
    return off_wb, off_wih0, off_bias, off_wout, rows, width


def rnn_wavefront_kernel(s_ref, a_ref, w_ref, r_ref, s_out_ref, *,
                         T, In, H, O, L):
    """Stacked-RNN forward as a layer wavefront, single kernel invocation.

    s_ref:     (B, H)          initial hidden state (shared across layers)
    a_ref:     (B, T*In)       inputs, lane-dense (free reshape of (B,T,In))
    w_ref:     (rows, width)   packed weights (see _pack_offsets / pack_params)
    r_ref:     (B, T*O)        sigmoid(reward_linear(top hidden)) per step
    s_out_ref: (B, L*T*H)      hidden state of every layer / step, laid out so
                               reshape(B, L, T, H) is the PyTorch s_list.

    Wavefront: stage k (k = 0..T+L-2) holds S[k] = [h_0[k] | h_1[k-1] | ...]
    in lanes; one (B,LH)@(LH,LH) matmul + add + tanh per stage.
    """
    B = s_ref.shape[0]
    LH = L * H
    f32 = jnp.float32
    off_wb, off_wih0, off_bias, off_wout, _, _ = _pack_offsets(T, In, H, O, L)

    # ---- loop-invariant weight loads & hoisted broadcasts (off the chain) ----
    w_block = w_ref[off_wb:off_wb + LH, 0:LH]                  # (LH, LH)
    w_ih0 = w_ref[off_wih0:off_wih0 + In, 0:H]                 # (In, H)
    b_all = w_ref[off_bias:off_bias + 1, 0:LH]                 # (1, LH)
    b_out = w_ref[off_bias + 1:off_bias + 2, 0:T * O]          # (1, T*O)
    w_out = w_ref[off_wout:off_wout + T * H, 0:T * O]          # (T*H, T*O)

    bcat = jnp.broadcast_to(b_all, (B, LH))                    # hoisted once
    bout = jnp.broadcast_to(b_out, (B, T * O))
    lane = jax.lax.broadcasted_iota(jnp.int32, (B, LH), 1)
    zpad = jnp.zeros((B, LH - H), f32) if LH > H else None

    a_all = a_ref[...].astype(f32)                             # (B, T*In)
    s0 = s_ref[...].astype(f32)                                # (B, H)
    s_init = jnp.concatenate([s0] * L, axis=-1) if L > 1 else s0   # (B, LH)

    # ---- wavefront recurrence: T + L - 1 serial matmul->add->tanh stages ----
    # TODO(synk): inter-layer dropout for drop_rate>0 (training) not implemented.
    S = s_init
    for k in range(T + L - 1):
        # additive term: x[k]@W_ih0 + b0 in layer-0 lanes, b_l elsewhere.
        # Independent of S -> fully off the serial chain.
        if k < T:
            x0_k = jnp.dot(a_all[:, k * In:(k + 1) * In], w_ih0,
                           preferred_element_type=f32)          # (B, H)
            if zpad is not None:
                x0_k = jnp.concatenate([x0_k, zpad], axis=-1)   # (B, LH)
            add_k = bcat + x0_k
        else:
            add_k = bcat

        # serial chain: one block matmul + one add + one tanh
        s_new = jnp.tanh(jnp.dot(S, w_block, preferred_element_type=f32) + add_k)
        if k < L - 1:
            # layers deeper than the wavefront front must keep the initial
            # hidden state until they start (h_l[-1] = s).
            s_new = jnp.where(lane < (k + 1) * H, s_new, s_init)
        S = s_new

        # per-stage write-back: layer l of stage k is time t = k - l.
        # Stores are off the chain; the vector-store slot is otherwise idle.
        for l in range(L):
            t = k - l
            if 0 <= t < T:
                c = (l * T + t) * H
                s_out_ref[:, c:c + H] = S[:, l * H:(l + 1) * H]

    # ---- reward head: one block-diagonal matmul + sigmoid, off the chain ----
    top = s_out_ref[:, (L - 1) * T * H:L * T * H]               # (B, T*H)
    r_ref[...] = jax.nn.sigmoid(
        jnp.dot(top, w_out, preferred_element_type=f32) + bout)


def pack_params(params, T):
    """Pack wavefront block weight, layer-0 input weight, pre-summed biases and
    the block-diagonal reward head into ONE kernel operand (3 DMAs total)."""
    L, H, _ = params["w_hh"].shape
    In = params["w_ih0"].shape[0]
    O = params["w_out"].shape[1]
    LH = L * H
    off_wb, off_wih0, off_bias, off_wout, rows, width = _pack_offsets(T, In, H, O, L)

    w_pack = jnp.zeros((rows, width), jnp.float32)

    # wavefront block weight  [[W_hh0, W_ih1, 0, ...], [0, W_hh1, W_ih2, ...], ...]
    w_pack = w_pack.at[off_wb:off_wb + H, 0:H].set(params["w_hh"][0])
    for j in range(1, L):
        w_pack = w_pack.at[off_wb + (j - 1) * H:off_wb + j * H,
                           j * H:(j + 1) * H].set(params["w_ih_r"][j - 1])
        w_pack = w_pack.at[off_wb + j * H:off_wb + (j + 1) * H,
                           j * H:(j + 1) * H].set(params["w_hh"][j])

    # layer-0 input projection
    w_pack = w_pack.at[off_wih0:off_wih0 + In, 0:H].set(params["w_ih0"])

    # pre-summed biases (b_ih + b_hh), lane-concatenated per layer
    b_rows = [params["b_ih0"][0] + params["b_hh"][0]]
    for l in range(1, L):
        b_rows.append(params["b_ih_r"][l - 1] + params["b_hh"][l])
    w_pack = w_pack.at[off_bias, 0:LH].set(jnp.concatenate(b_rows, axis=-1))
    w_pack = w_pack.at[off_bias + 1, 0:T * O].set(jnp.tile(params["b_out"][0], T))

    # block-diagonal reward weight: applies reward_linear to all T steps at once
    for t in range(T):
        w_pack = w_pack.at[off_wout + t * H:off_wout + (t + 1) * H,
                           t * O:(t + 1) * O].set(params["w_out"])
    return w_pack


def build_model_forward(params, s, a_list):
    """s: (B, H) f32, a_list: (B, T, In) f32 ->
       (r_list (B, T, O), s_list (B, L, T, H)) matching the PyTorch module."""
    B, T, In = a_list.shape
    H = s.shape[1]
    O = params["w_out"].shape[1]
    L = params["w_hh"].shape[0]

    # Packed weights are constant-folded at compile time when params are
    # closed-over constants (as in the jit below).
    w_pack = pack_params(params, T)
    a2 = jnp.reshape(a_list, (B, T * In))          # free reshape (contiguous)

    kernel = functools.partial(rnn_wavefront_kernel, T=T, In=In, H=H, O=O, L=L)
    vmem = pl.BlockSpec(memory_space=pltpu.MemorySpace.VMEM)
    r2, s2 = pl.pallas_call(
        kernel,
        out_shape=(jax.ShapeDtypeStruct((B, T * O), jnp.float32),
                   jax.ShapeDtypeStruct((B, L * T * H), jnp.float32)),
        in_specs=[vmem, vmem, vmem],
        out_specs=(vmem, vmem),
    )(s, a2, w_pack)

    # free reshapes — no XLA transpose ops around the kernel
    r_list = jnp.reshape(r2, (B, T, O))
    s_list = jnp.reshape(s2, (B, L, T, H))
    return r_list, s_list


def reference_forward(params, s, a_list):
    """Pure-JAX reference of the PyTorch forward (for correctness check)."""
    B, T, In = a_list.shape
    L = params["w_hh"].shape[0]
    h = [s for _ in range(L)]
    r_steps, s_steps = [], []
    for t in range(T):
        x = a_list[:, t, :]
        h[0] = jnp.tanh(x @ params["w_ih0"] + params["b_ih0"]
                        + h[0] @ params["w_hh"][0] + params["b_hh"][0:1, :])
        layer_in = h[0]
        for l in range(1, L):
            h[l] = jnp.tanh(layer_in @ params["w_ih_r"][l - 1]
                            + params["b_ih_r"][l - 1:l, :]
                            + h[l] @ params["w_hh"][l]
                            + params["b_hh"][l:l + 1, :])
            layer_in = h[l]
        r_steps.append(jax.nn.sigmoid(layer_in @ params["w_out"] + params["b_out"]))
        s_steps.append(jnp.stack(h, axis=0))
    r_list = jnp.stack(r_steps, axis=0).transpose(1, 0, 2)            # (B, T, O)
    s_list = jnp.stack(s_steps, axis=0).transpose(2, 1, 0, 3)         # (B, L, T, H)
    return r_list, s_list


def init_params(key, In, H, O, L):
    """RNN weights: U(-1/sqrt(H), 1/sqrt(H)) (PyTorch default);
    reward_linear weight: xavier_uniform (initializer='glorot_uniform')."""
    ks = jax.random.split(key, 9)
    rb = 1.0 / math.sqrt(H)
    xb = math.sqrt(6.0 / (H + O))
    u = lambda k, shape, b: jax.random.uniform(k, shape, jnp.float32, -b, b)
    return {
        "w_ih0":  u(ks[0], (In, H), rb),
        "b_ih0":  u(ks[1], (1, H), rb),
        "w_ih_r": u(ks[2], (L - 1, H, H), rb),
        "b_ih_r": u(ks[3], (L - 1, H), rb),
        "w_hh":   u(ks[4], (L, H, H), rb),
        "b_hh":   u(ks[5], (L, H), rb),
        "w_out":  u(ks[6], (H, O), xb),
        "b_out":  u(ks[7], (1, O), rb),
    }


if __name__ == "__main__":
    # shapes implied by the forward: batch=4, seq=8, input_neuron_size=8,
    # h_input_neuron_size=32, output_neuron_size=4, num_layers=2
    B, T, In, H, O, L = 4, 8, 8, 32, 4, 2

    key = jax.random.PRNGKey(0)
    k_s, k_a, k_p = jax.random.split(key, 3)
    s = jax.random.normal(k_s, (B, H), jnp.float32)
    a_list = jax.random.normal(k_a, (B, T, In), jnp.float32)
    params = init_params(k_p, In, H, O, L)

    fwd = jax.jit(functools.partial(build_model_forward, params))
    r_list, s_list = fwd(s, a_list)
    jax.block_until_ready((r_list, s_list))

    assert r_list.shape == (B, T, O), r_list.shape
    assert s_list.shape == (B, L, T, H), s_list.shape
    assert bool(jnp.all(jnp.isfinite(r_list))) and bool(jnp.all(jnp.isfinite(s_list)))
    assert bool(jnp.all((r_list >= 0.0) & (r_list <= 1.0)))

    # correctness vs pure-JAX reference of the PyTorch forward
    r_ref, s_ref_out = reference_forward(params, s, a_list)
    assert bool(jnp.allclose(r_list, r_ref, atol=3e-3, rtol=3e-3))
    assert bool(jnp.allclose(s_list, s_ref_out, atol=3e-3, rtol=3e-3))

    print("KERNEL_OK")
</pallas_src>

<mosaic_0001>
module attributes {stable_mosaic.version = 11 : i64} {
  func.func @rnn_wavefront_kernel(%arg0: memref<4x32xf32, #tpu.memory_space<vmem>>, %arg1: memref<4x64xf32, #tpu.memory_space<vmem>>, %arg2: memref<336x64xf32, #tpu.memory_space<vmem>>, %arg3: memref<4x32xf32, #tpu.memory_space<vmem>>, %arg4: memref<4x512xf32, #tpu.memory_space<vmem>>) attributes {dimension_semantics = [], scalar_prefetch = 0 : i64, scratch_operands = 0 : i64, tpu.core_type = #tpu.core_type<tc>} {
    %c0 = arith.constant 0 : index
    %c0_0 = arith.constant 0 : index
    %0 = vector.load %arg2[%c0, %c0_0] : memref<336x64xf32, #tpu.memory_space<vmem>>, vector<64x64xf32>
    %c64 = arith.constant 64 : index
    %c0_1 = arith.constant 0 : index
    %1 = vector.load %arg2[%c64, %c0_1] : memref<336x64xf32, #tpu.memory_space<vmem>>, vector<8x32xf32>
    %c72 = arith.constant 72 : index
    %c0_2 = arith.constant 0 : index
    %2 = vector.load %arg2[%c72, %c0_2] : memref<336x64xf32, #tpu.memory_space<vmem>>, vector<1x64xf32>
    %c73 = arith.constant 73 : index
    %c0_3 = arith.constant 0 : index
    %3 = vector.load %arg2[%c73, %c0_3] : memref<336x64xf32, #tpu.memory_space<vmem>>, vector<1x32xf32>
    %c80 = arith.constant 80 : index
    %c0_4 = arith.constant 0 : index
    %4 = vector.load %arg2[%c80, %c0_4] : memref<336x64xf32, #tpu.memory_space<vmem>>, vector<256x32xf32>
    %5 = vector.shape_cast %2 : vector<1x64xf32> to vector<1x64xf32>
    %6 = vector.broadcast %5 : vector<1x64xf32> to vector<4x64xf32>
    %7 = vector.shape_cast %3 : vector<1x32xf32> to vector<1x32xf32>
    %8 = vector.broadcast %7 : vector<1x32xf32> to vector<4x32xf32>
    %9 = tpu.iota {dimensions = array<i32: 1>} : vector<4x64xi32>
    %cst = arith.constant 0.000000e+00 : f32
    %10 = vector.broadcast %cst : f32 to vector<4x32xf32>
    %c0_5 = arith.constant 0 : index
    %c0_6 = arith.constant 0 : index
    %11 = vector.load %arg1[%c0_5, %c0_6] : memref<4x64xf32, #tpu.memory_space<vmem>>, vector<4x64xf32>
    %c0_7 = arith.constant 0 : index
    %c0_8 = arith.constant 0 : index
    %12 = vector.load %arg0[%c0_7, %c0_8] : memref<4x32xf32, #tpu.memory_space<vmem>>, vector<4x32xf32>
    %13 = tpu.concatenate %12, %12 in 1 : vector<4x32xf32>, vector<4x32xf32> -> vector<4x64xf32>
    %14 = vector.extract_strided_slice %11 {offsets = [0, 0], sizes = [4, 8], strides = [1, 1]} : vector<4x64xf32> to vector<4x8xf32>
    %cst_9 = arith.constant dense<0.000000e+00> : vector<4x32xf32>
    %15 = tpu.matmul %14, %1, %cst_9 {dimension_numbers = #tpu.dot_dimension_numbers<[1], [0], [0], [1], [0, 0, 1, 1], [], []>} : vector<4x8xf32>, vector<8x32xf32>, vector<4x32xf32> -> vector<4x32xf32>
    %16 = tpu.concatenate %15, %10 in 1 : vector<4x32xf32>, vector<4x32xf32> -> vector<4x64xf32>
    %17 = arith.addf %6, %16 : vector<4x64xf32>
    %cst_10 = arith.constant dense<0.000000e+00> : vector<4x64xf32>
    %18 = tpu.matmul %13, %0, %cst_10 {dimension_numbers = #tpu.dot_dimension_numbers<[1], [0], [0], [1], [0, 0, 1, 1], [], []>} : vector<4x64xf32>, vector<64x64xf32>, vector<4x64xf32> -> vector<4x64xf32>
    %19 = arith.addf %18, %17 : vector<4x64xf32>
    %20 = math.tanh %19 : vector<4x64xf32>
    %c32_i32 = arith.constant 32 : i32
    %21 = vector.broadcast %c32_i32 : i32 to vector<4x64xi32>
    %22 = arith.cmpi slt, %9, %21 : vector<4x64xi32>
    %23 = arith.select %22, %20, %13 : vector<4x64xi1>, vector<4x64xf32>
    %24 = vector.extract_strided_slice %23 {offsets = [0, 0], sizes = [4, 32], strides = [1, 1]} : vector<4x64xf32> to vector<4x32xf32>
    %c0_11 = arith.constant 0 : index
    %c0_12 = arith.constant 0 : index
    %25 = vector.load %arg4[%c0_11, %c0_12] : memref<4x512xf32, #tpu.memory_space<vmem>>, vector<4x32xf32>
    tpu.vector_store %arg4[%c0_11, %c0_12], %24 {strides = array<i32>} : memref<4x512xf32, #tpu.memory_space<vmem>>, vector<4x32xf32>,
    %26 = vector.extract_strided_slice %11 {offsets = [0, 8], sizes = [4, 8], strides = [1, 1]} : vector<4x64xf32> to vector<4x8xf32>
    %cst_13 = arith.constant dense<0.000000e+00> : vector<4x32xf32>
    %27 = tpu.matmul %26, %1, %cst_13 {dimension_numbers = #tpu.dot_dimension_numbers<[1], [0], [0], [1], [0, 0, 1, 1], [], []>} : vector<4x8xf32>, vector<8x32xf32>, vector<4x32xf32> -> vector<4x32xf32>
    %28 = tpu.concatenate %27, %10 in 1 : vector<4x32xf32>, vector<4x32xf32> -> vector<4x64xf32>
    %29 = arith.addf %6, %28 : vector<4x64xf32>
    %cst_14 = arith.constant dense<0.000000e+00> : vector<4x64xf32>
    %30 = tpu.matmul %23, %0, %cst_14 {dimension_numbers = #tpu.dot_dimension_numbers<[1], [0], [0], [1], [0, 0, 1, 1], [], []>} : vector<4x64xf32>, vector<64x64xf32>, vector<4x64xf32> -> vector<4x64xf32>
    %31 = arith.addf %30, %29 : vector<4x64xf32>
    %32 = math.tanh %31 : vector<4x64xf32>
    %33 = vector.extract_strided_slice %32 {offsets = [0, 0], sizes = [4, 32], strides = [1, 1]} : vector<4x64xf32> to vector<4x32xf32>
    %c0_15 = arith.constant 0 : index
    %c32 = arith.constant 32 : index
    %34 = vector.load %arg4[%c0_15, %c32] : memref<4x512xf32, #tpu.memory_space<vmem>>, vector<4x32xf32>
    tpu.vector_store %arg4[%c0_15, %c32], %33 {strides = array<i32>} : memref<4x512xf32, #tpu.memory_space<vmem>>, vector<4x32xf32>,
    %35 = vector.extract_strided_slice %32 {offsets = [0, 32], sizes = [4, 32], strides = [1, 1]} : vector<4x64xf32> to vector<4x32xf32>
    %c0_16 = arith.constant 0 : index
    %c256 = arith.constant 256 : index
    %36 = vector.load %arg4[%c0_16, %c256] : memref<4x512xf32, #tpu.memory_space<vmem>>, vector<4x32xf32>
    tpu.vector_store %arg4[%c0_16, %c256], %35 {strides = array<i32>} : memref<4x512xf32, #tpu.memory_space<vmem>>, vector<4x32xf32>,
    %37 = vector.extract_strided_slice %11 {offsets = [0, 16], sizes = [4, 8], strides = [1, 1]} : vector<4x64xf32> to vector<4x8xf32>
    %cst_17 = arith.constant dense<0.000000e+00> : vector<4x32xf32>
    %38 = tpu.matmul %37, %1, %cst_17 {dimension_numbers = #tpu.dot_dimension_numbers<[1], [0], [0], [1], [0, 0, 1, 1], [], []>} : vector<4x8xf32>, vector<8x32xf32>, vector<4x32xf32> -> vector<4x32xf32>
    %39 = tpu.concatenate %38, %10 in 1 : vector<4x32xf32>, vector<4x32xf32> -> vector<4x64xf32>
    %40 = arith.addf %6, %39 : vector<4x64xf32>
    %cst_18 = arith.constant dense<0.000000e+00> : vector<4x64xf32>
    %41 = tpu.matmul %32, %0, %cst_18 {dimension_numbers = #tpu.dot_dimension_numbers<[1], [0], [0], [1], [0, 0, 1, 1], [], []>} : vector<4x64xf32>, vector<64x64xf32>, vector<4x64xf32> -> vector<4x64xf32>
    %42 = arith.addf %41, %40 : vector<4x64xf32>
    %43 = math.tanh %42 : vector<4x64xf32>
    %44 = vector.extract_strided_slice %43 {offsets = [0, 0], sizes = [4, 32], strides = [1, 1]} : vector<4x64xf32> to vector<4x32xf32>
    %c0_19 = arith.constant 0 : index
    %c64_20 = arith.constant 64 : index
    %45 = vector.load %arg4[%c0_19, %c64_20] : memref<4x512xf32, #tpu.memory_space<vmem>>, vector<4x32xf32>
    tpu.vector_store %arg4[%c0_19, %c64_20], %44 {strides = array<i32>} : memref<4x512xf32, #tpu.memory_space<vmem>>, vector<4x32xf32>,
    %46 = vector.extract_strided_slice %43 {offsets = [0, 32], sizes = [4, 32], strides = [1, 1]} : vector<4x64xf32> to vector<4x32xf32>
    %c0_21 = arith.constant 0 : index
    %c288 = arith.constant 288 : index
    %47 = vector.load %arg4[%c0_21, %c288] : memref<4x512xf32, #tpu.memory_space<vmem>>, vector<4x32xf32>
    tpu.vector_store %arg4[%c0_21, %c288], %46 {strides = array<i32>} : memref<4x512xf32, #tpu.memory_space<vmem>>, vector<4x32xf32>,
    %48 = vector.extract_strided_slice %11 {offsets = [0, 24], sizes = [4, 8], strides = [1, 1]} : vector<4x64xf32> to vector<4x8xf32>
    %cst_22 = arith.constant dense<0.000000e+00> : vector<4x32xf32>
    %49 = tpu.matmul %48, %1, %cst_22 {dimension_numbers = #tpu.dot_dimension_numbers<[1], [0], [0], [1], [0, 0, 1, 1], [], []>} : vector<4x8xf32>, vector<8x32xf32>, vector<4x32xf32> -> vector<4x32xf32>
    %50 = tpu.concatenate %49, %10 in 1 : vector<4x32xf32>, vector<4x32xf32> -> vector<4x64xf32>
    %51 = arith.addf %6, %50 : vector<4x64xf32>
    %cst_23 = arith.constant dense<0.000000e+00> : vector<4x64xf32>
    %52 = tpu.matmul %43, %0, %cst_23 {dimension_numbers = #tpu.dot_dimension_numbers<[1], [0], [0], [1], [0, 0, 1, 1], [], []>} : vector<4x64xf32>, vector<64x64xf32>, vector<4x64xf32> -> vector<4x64xf32>
    %53 = arith.addf %52, %51 : vector<4x64xf32>
    %54 = math.tanh %53 : vector<4x64xf32>
    %55 = vector.extract_strided_slice %54 {offsets = [0, 0], sizes = [4, 32], strides = [1, 1]} : vector<4x64xf32> to vector<4x32xf32>
    %c0_24 = arith.constant 0 : index
    %c96 = arith.constant 96 : index
    %56 = vector.load %arg4[%c0_24, %c96] : memref<4x512xf32, #tpu.memory_space<vmem>>, vector<4x32xf32>
    tpu.vector_store %arg4[%c0_24, %c96], %55 {strides = array<i32>} : memref<4x512xf32, #tpu.memory_space<vmem>>, vector<4x32xf32>,
    %57 = vector.extract_strided_slice %54 {offsets = [0, 32], sizes = [4, 32], strides = [1, 1]} : vector<4x64xf32> to vector<4x32xf32>
    %c0_25 = arith.constant 0 : index
    %c320 = arith.constant 320 : index
    %58 = vector.load %arg4[%c0_25, %c320] : memref<4x512xf32, #tpu.memory_space<vmem>>, vector<4x32xf32>
    tpu.vector_store %arg4[%c0_25, %c320], %57 {strides = array<i32>} : memref<4x512xf32, #tpu.memory_space<vmem>>, vector<4x32xf32>,
    %59 = vector.extract_strided_slice %11 {offsets = [0, 32], sizes = [4, 8], strides = [1, 1]} : vector<4x64xf32> to vector<4x8xf32>
    %cst_26 = arith.constant dense<0.000000e+00> : vector<4x32xf32>
    %60 = tpu.matmul %59, %1, %cst_26 {dimension_numbers = #tpu.dot_dimension_numbers<[1], [0], [0], [1], [0, 0, 1, 1], [], []>} : vector<4x8xf32>, vector<8x32xf32>, vector<4x32xf32> -> vector<4x32xf32>
    %61 = tpu.concatenate %60, %10 in 1 : vector<4x32xf32>, vector<4x32xf32> -> vector<4x64xf32>
    %62 = arith.addf %6, %61 : vector<4x64xf32>
    %cst_27 = arith.constant dense<0.000000e+00> : vector<4x64xf32>
    %63 = tpu.matmul %54, %0, %cst_27 {dimension_numbers = #tpu.dot_dimension_numbers<[1], [0], [0], [1], [0, 0, 1, 1], [], []>} : vector<4x64xf32>, vector<64x64xf32>, vector<4x64xf32> -> vector<4x64xf32>
    %64 = arith.addf %63, %62 : vector<4x64xf32>
    %65 = math.tanh %64 : vector<4x64xf32>
    %66 = vector.extract_strided_slice %65 {offsets = [0, 0], sizes = [4, 32], strides = [1, 1]} : vector<4x64xf32> to vector<4x32xf32>
    %c0_28 = arith.constant 0 : index
    %c128 = arith.constant 128 : index
    %67 = vector.load %arg4[%c0_28, %c128] : memref<4x512xf32, #tpu.memory_space<vmem>>, vector<4x32xf32>
    tpu.vector_store %arg4[%c0_28, %c128], %66 {strides = array<i32>} : memref<4x512xf32, #tpu.memory_space<vmem>>, vector<4x32xf32>,
    %68 = vector.extract_strided_slice %65 {offsets = [0, 32], sizes = [4, 32], strides = [1, 1]} : vector<4x64xf32> to vector<4x32xf32>
    %c0_29 = arith.constant 0 : index
    %c352 = arith.constant 352 : index
    %69 = vector.load %arg4[%c0_29, %c352] : memref<4x512xf32, #tpu.memory_space<vmem>>, vector<4x32xf32>
    tpu.vector_store %arg4[%c0_29, %c352], %68 {strides = array<i32>} : memref<4x512xf32, #tpu.memory_space<vmem>>, vector<4x32xf32>,
    %70 = vector.extract_strided_slice %11 {offsets = [0, 40], sizes = [4, 8], strides = [1, 1]} : vector<4x64xf32> to vector<4x8xf32>
    %cst_30 = arith.constant dense<0.000000e+00> : vector<4x32xf32>
    %71 = tpu.matmul %70, %1, %cst_30 {dimension_numbers = #tpu.dot_dimension_numbers<[1], [0], [0], [1], [0, 0, 1, 1], [], []>} : vector<4x8xf32>, vector<8x32xf32>, vector<4x32xf32> -> vector<4x32xf32>
    %72 = tpu.concatenate %71, %10 in 1 : vector<4x32xf32>, vector<4x32xf32> -> vector<4x64xf32>
    %73 = arith.addf %6, %72 : vector<4x64xf32>
    %cst_31 = arith.constant dense<0.000000e+00> : vector<4x64xf32>
    %74 = tpu.matmul %65, %0, %cst_31 {dimension_numbers = #tpu.dot_dimension_numbers<[1], [0], [0], [1], [0, 0, 1, 1], [], []>} : vector<4x64xf32>, vector<64x64xf32>, vector<4x64xf32> -> vector<4x64xf32>
    %75 = arith.addf %74, %73 : vector<4x64xf32>
    %76 = math.tanh %75 : vector<4x64xf32>
    %77 = vector.extract_strided_slice %76 {offsets = [0, 0], sizes = [4, 32], strides = [1, 1]} : vector<4x64xf32> to vector<4x32xf32>
    %c0_32 = arith.constant 0 : index
    %c160 = arith.constant 160 : index
    %78 = vector.load %arg4[%c0_32, %c160] : memref<4x512xf32, #tpu.memory_space<vmem>>, vector<4x32xf32>
    tpu.vector_store %arg4[%c0_32, %c160], %77 {strides = array<i32>} : memref<4x512xf32, #tpu.memory_space<vmem>>, vector<4x32xf32>,
    %79 = vector.extract_strided_slice %76 {offsets = [0, 32], sizes = [4, 32], strides = [1, 1]} : vector<4x64xf32> to vector<4x32xf32>
    %c0_33 = arith.constant 0 : index
    %c384 = arith.constant 384 : index
    %80 = vector.load %arg4[%c0_33, %c384] : memref<4x512xf32, #tpu.memory_space<vmem>>, vector<4x32xf32>
    tpu.vector_store %arg4[%c0_33, %c384], %79 {strides = array<i32>} : memref<4x512xf32, #tpu.memory_space<vmem>>, vector<4x32xf32>,
    %81 = vector.extract_strided_slice %11 {offsets = [0, 48], sizes = [4, 8], strides = [1, 1]} : vector<4x64xf32> to vector<4x8xf32>
    %cst_34 = arith.constant dense<0.000000e+00> : vector<4x32xf32>
    %82 = tpu.matmul %81, %1, %cst_34 {dimension_numbers = #tpu.dot_dimension_numbers<[1], [0], [0], [1], [0, 0, 1, 1], [], []>} : vector<4x8xf32>, vector<8x32xf32>, vector<4x32xf32> -> vector<4x32xf32>
    %83 = tpu.concatenate %82, %10 in 1 : vector<4x32xf32>, vector<4x32xf32> -> vector<4x64xf32>
    %84 = arith.addf %6, %83 : vector<4x64xf32>
    %cst_35 = arith.constant dense<0.000000e+00> : vector<4x64xf32>
    %85 = tpu.matmul %76, %0, %cst_35 {dimension_numbers = #tpu.dot_dimension_numbers<[1], [0], [0], [1], [0, 0, 1, 1], [], []>} : vector<4x64xf32>, vector<64x64xf32>, vector<4x64xf32> -> vector<4x64xf32>
    %86 = arith.addf %85, %84 : vector<4x64xf32>
    %87 = math.tanh %86 : vector<4x64xf32>
    %88 = vector.extract_strided_slice %87 {offsets = [0, 0], sizes = [4, 32], strides = [1, 1]} : vector<4x64xf32> to vector<4x32xf32>
    %c0_36 = arith.constant 0 : index
    %c192 = arith.constant 192 : index
    %89 = vector.load %arg4[%c0_36, %c192] : memref<4x512xf32, #tpu.memory_space<vmem>>, vector<4x32xf32>
    tpu.vector_store %arg4[%c0_36, %c192], %88 {strides = array<i32>} : memref<4x512xf32, #tpu.memory_space<vmem>>, vector<4x32xf32>,
    %90 = vector.extract_strided_slice %87 {offsets = [0, 32], sizes = [4, 32], strides = [1, 1]} : vector<4x64xf32> to vector<4x32xf32>
    %c0_37 = arith.constant 0 : index
    %c416 = arith.constant 416 : index
    %91 = vector.load %arg4[%c0_37, %c416] : memref<4x512xf32, #tpu.memory_space<vmem>>, vector<4x32xf32>
    tpu.vector_store %arg4[%c0_37, %c416], %90 {strides = array<i32>} : memref<4x512xf32, #tpu.memory_space<vmem>>, vector<4x32xf32>,
    %92 = vector.extract_strided_slice %11 {offsets = [0, 56], sizes = [4, 8], strides = [1, 1]} : vector<4x64xf32> to vector<4x8xf32>
    %cst_38 = arith.constant dense<0.000000e+00> : vector<4x32xf32>
    %93 = tpu.matmul %92, %1, %cst_38 {dimension_numbers = #tpu.dot_dimension_numbers<[1], [0], [0], [1], [0, 0, 1, 1], [], []>} : vector<4x8xf32>, vector<8x32xf32>, vector<4x32xf32> -> vector<4x32xf32>
    %94 = tpu.concatenate %93, %10 in 1 : vector<4x32xf32>, vector<4x32xf32> -> vector<4x64xf32>
    %95 = arith.addf %6, %94 : vector<4x64xf32>
    %cst_39 = arith.constant dense<0.000000e+00> : vector<4x64xf32>
    %96 = tpu.matmul %87, %0, %cst_39 {dimension_numbers = #tpu.dot_dimension_numbers<[1], [0], [0], [1], [0, 0, 1, 1], [], []>} : vector<4x64xf32>, vector<64x64xf32>, vector<4x64xf32> -> vector<4x64xf32>
    %97 = arith.addf %96, %95 : vector<4x64xf32>
    %98 = math.tanh %97 : vector<4x64xf32>
    %99 = vector.extract_strided_slice %98 {offsets = [0, 0], sizes = [4, 32], strides = [1, 1]} : vector<4x64xf32> to vector<4x32xf32>
    %c0_40 = arith.constant 0 : index
    %c224 = arith.constant 224 : index
    %100 = vector.load %arg4[%c0_40, %c224] : memref<4x512xf32, #tpu.memory_space<vmem>>, vector<4x32xf32>
    tpu.vector_store %arg4[%c0_40, %c224], %99 {strides = array<i32>} : memref<4x512xf32, #tpu.memory_space<vmem>>, vector<4x32xf32>,
    %101 = vector.extract_strided_slice %98 {offsets = [0, 32], sizes = [4, 32], strides = [1, 1]} : vector<4x64xf32> to vector<4x32xf32>
    %c0_41 = arith.constant 0 : index
    %c448 = arith.constant 448 : index
    %102 = vector.load %arg4[%c0_41, %c448] : memref<4x512xf32, #tpu.memory_space<vmem>>, vector<4x32xf32>
    tpu.vector_store %arg4[%c0_41, %c448], %101 {strides = array<i32>} : memref<4x512xf32, #tpu.memory_space<vmem>>, vector<4x32xf32>,
    %cst_42 = arith.constant dense<0.000000e+00> : vector<4x64xf32>
    %103 = tpu.matmul %98, %0, %cst_42 {dimension_numbers = #tpu.dot_dimension_numbers<[1], [0], [0], [1], [0, 0, 1, 1], [], []>} : vector<4x64xf32>, vector<64x64xf32>, vector<4x64xf32> -> vector<4x64xf32>
    %104 = arith.addf %103, %6 : vector<4x64xf32>
    %105 = math.tanh %104 : vector<4x64xf32>
    %106 = vector.extract_strided_slice %105 {offsets = [0, 32], sizes = [4, 32], strides = [1, 1]} : vector<4x64xf32> to vector<4x32xf32>
    %c0_43 = arith.constant 0 : index
    %c480 = arith.constant 480 : index
    %107 = vector.load %arg4[%c0_43, %c480] : memref<4x512xf32, #tpu.memory_space<vmem>>, vector<4x32xf32>
    tpu.vector_store %arg4[%c0_43, %c480], %106 {strides = array<i32>} : memref<4x512xf32, #tpu.memory_space<vmem>>, vector<4x32xf32>,
    %c0_44 = arith.constant 0 : index
    %c256_45 = arith.constant 256 : index
    %108 = vector.load %arg4[%c0_44, %c256_45] : memref<4x512xf32, #tpu.memory_space<vmem>>, vector<4x256xf32>
    %cst_46 = arith.constant dense<0.000000e+00> : vector<4x32xf32>
    %109 = tpu.matmul %108, %4, %cst_46 {dimension_numbers = #tpu.dot_dimension_numbers<[1], [0], [0], [1], [0, 0, 1, 1], [], []>} : vector<4x256xf32>, vector<256x32xf32>, vector<4x32xf32> -> vector<4x32xf32>
    %110 = arith.addf %109, %8 : vector<4x32xf32>
    %111 = arith.negf %110 : vector<4x32xf32>
    %112 = math.exp %111 : vector<4x32xf32>
    %cst_47 = arith.constant 1.000000e+00 : f32
    %113 = vector.broadcast %cst_47 : f32 to vector<4x32xf32>
    %114 = arith.addf %113, %112 : vector<4x32xf32>
    %115 = arith.divf %113, %114 : vector<4x32xf32>
    %c0_48 = arith.constant 0 : index
    %c0_49 = arith.constant 0 : index
    %116 = vector.load %arg3[%c0_48, %c0_49] : memref<4x32xf32, #tpu.memory_space<vmem>>, vector<4x32xf32>
    tpu.vector_store %arg3[%c0_48, %c0_49], %115 {strides = array<i32>} : memref<4x32xf32, #tpu.memory_space<vmem>>, vector<4x32xf32>,
    return
  }
}

</mosaic_0001>

<bundles_post_ra>
// kernel: tile.6
= control target key start
LH: loop header
LB: loop body
LE: loop exit
PB: predicated region body
PF: predicated region fallthrough
CT: control target
= control target key end

     0   :  { %s22_s0 = inlined_call_operand.vmem [shape: f32[4], index: 0, kind: input, shape index: {}]   ;;  %s23_s1 = inlined_call_operand.vmem [shape: f32[8,4], index: 1, kind: output, shape index: {}]  }
   0x1   :  { %v4_v0 = vld [vmem:[%s22_s0] ss:$0 sm:$0xff] }
   0x2   :  { %5 = vst [vmem:[%s23_s1] sm:$0xff] %v4_v0 }

// kernel: build_model_forward.1
= control target key start
LH: loop header
LB: loop body
LE: loop exit
PB: predicated region body
PF: predicated region fallthrough
CT: control target
= control target key end

     0   :  { %v2038_v1 = vmov 0.0|0.0   ;;  %v2039_v4 = vmov 0.0   ;;  %s2040_s21 = smov 32   ;;  %vm2041_vm0 = vmmov 0   ;;  %vm77_vm1 = vcmask 64512   ;;  %s2043_s11 = smov 112   ;;  %s2494_s0 = inlined_call_operand.vmem [shape: f32[4,32], index: 0, kind: input, shape index: {}]   ;;  %s2495_s2 = inlined_call_operand.vmem [shape: f32[336,64], index: 2, kind: input, shape index: {}]   ;;  %s2496_s1 = inlined_call_operand.vmem [shape: f32[4,64], index: 1, kind: input, shape index: {}]   ;;  %s2497_s4 = inlined_call_operand.vmem [shape: f32[4,512], index: 4, kind: output, shape index: {1}]   ;;  %s2498_s3 = inlined_call_operand.vmem [shape: f32[4,32], index: 3, kind: output, shape index: {0}]  }
   0x1   :  { %v70_v0 = vld [vmem:[%s2494_s0] sm:$0xf]  ;;  %1863 = vmatprep.subr.bf16.mxu1 %v2038_v1  ;;  %v17_v3 = vld [vmem:[%s2495_s2 + $0x8] sm:$0xff]  ;;  %1652 = vmatprep.subr.mxu0 %v2039_v4  ;;  %v18_v6 = vld [vmem:[%s2495_s2 + $0x10] sm:$0xff]  ;;  %vm75_vm2 = vcmask 261120   ;;  %vm153_vm3 = vcmask 523264   ;;  %v67_v28 = vlaneseq }
   0x2   :  { %v16_v2 = vld [vmem:[%s2495_s2] sm:$0xff]  ;;  %72 = vrot.lane.b32.xlu0 %v70_v0, %s2040_s21  ;;  %v19_v7 = vld [vmem:[%s2495_s2 + $0x18] sm:$0xff]  ;;  %1654 = vmatprep.mubr.msk.f32.mxu0 %vm2041_vm0, %v2039_v4  ;;  %v21_v12 = vld [vmem:[%s2495_s2 + $0x28] sm:$0xff]  ;;  %vm230_vm5 = vcmask 257024   ;;  %s2044_s16 = smov 96   ;;  %s2045_s17 = smov 80  }
   0x3   :  { %v2087_v5 = vpack.c.bf16 %v17_v3, %v16_v2  ;;  %v2100_v8 = vld [vmem:[%s2495_s2 + $0x40] sm:$0xff]  ;;  %1673 = vmatprep.mubr.msk.f32.mxu1 %vm2041_vm0, %v2039_v4  ;;  %v2110_v10 = vpack.c.bf16 %v19_v7, %v18_v6  ;;  %v22_v14 = vld [vmem:[%s2495_s2 + $0x30] sm:$0xff]  ;;  %v23_v15 = vld [vmem:[%s2495_s2 + $0x38] sm:$0xff]  ;;  %v68_v29 = vand.u32 127, %v67_v28  ;;  %s2046_s18 = smov 104   ;;  %vm386_vm6 = vcmask 519424  }
   0x4   :  { %v2105_v9 = vld [vmem:[%s2496_s1] sm:$0xf]  ;;  %1653 = vmatpush3.msra.mxu0 %v2100_v8  ;;  %s2042_s1 = smov 120   ;;  %v2139_v16 = vpack.c.bf16 %v23_v15, %v22_v14  ;;  %v2165_v22 = vld [vmem:[%s2495_s2 + $0x48] ss:$0 sm:$0xff]  ;;  %s2047_s23 = smov 88  }
   0x5   :  { %1865 = vmatpush3.bf16.msra.mxu1 %v2087_v5  ;;  %v20_v11 = vld [vmem:[%s2495_s2 + $0x20] sm:$0xff]  ;;  %1655 = vmatmul.mubr.msk.f32.vlgmr.msra.gmra.mrb[0].mxu0 %vm77_vm1, %v2105_v9  ;;  %vm228_vm4 = vcmp.lt.s32.totalorder %v68_v29, 32  ;;  %vm545_vm7 = vcmask 781824   ;;  %s2048_s28 = smov 64   ;;  %s2049_s29 = smov 72   ;;  %vm701_vm8 = vcmask 1044224  }
   0x6   :  { %1866 = vmatprep.subr.bf16.mxu1 %v2038_v1  ;;  %232 = vrot.lane.b32.xlu0 %v2105_v9, %s2042_s1  ;;  %v2128_v13 = vpack.c.bf16 %v21_v12, %v20_v11 }
   0x7   :  { %1676 = vmatprep.subr.mxu0 %v2039_v4  ;;  %1678 = vmatprep.mubr.msk.f32.mxu0 %vm2041_vm0, %v2039_v4 }
   0x8   :  { %1677 = vmatpush3.msra.mxu0 %v2100_v8  ;;  %392 = vrot.lane.b32.xlu1 %v2105_v9, %s2043_s11 }
   0x9   :  { %1868 = vmatpush3.bf16.msra.mxu1 %v2110_v10  ;;  %1700 = vmatprep.subr.mxu0 %v2039_v4 }
   0xa   :  { %1869 = vmatprep.subr.bf16.mxu1 %v2038_v1  ;;  %707 = vrot.lane.b32.xlu0 %v2105_v9, %s2044_s16 }
   0xc   :  { %548 = vrot.lane.b32.xlu1 %v2105_v9, %s2046_s18 }
   0xd   :  { %1871 = vmatpush3.bf16.msra.mxu1 %v2128_v13 }
   0xe   :  { %1872 = vmatprep.subr.bf16.mxu1 %v2038_v1  ;;  %1020 = vrot.lane.b32.xlu0 %v2105_v9, %s2045_s17 }
  0x10   :  { %862 = vrot.lane.b32.xlu1 %v2105_v9, %s2047_s23 }
  0x11   :  { %1874 = vmatpush3.bf16.msra.mxu1 %v2139_v16 }
  0x12   :  { %1875 = vmatprep.subr.bf16.mxu1 %v2038_v1 }
  0x14   :  { %1175 = vrot.lane.b32.xlu1 %v2105_v9, %s2049_s29 }
  0x74   :  { %v73_v17 = vpop.permute.xlu0 %72 }
  0x75   :  { %v76_v18 = vsel %vm75_vm2, %v70_v0, %v73_v17 }
  0x76   :  { %1674 = vmatmul.mubr.msk.f32.vlgmr.msra.gmra.mrb[0].mxu1 %vm153_vm3, %v76_v18 }
  0x77   :  { %1877 = vmatpush3.bf16.msra.mxu1 %v2087_v5  ;;  %1697 = vmatprep.mubr.msk.f32.mxu1 %vm2041_vm0, %v2039_v4 }
  0x78   :  { %1878 = vmatprep.subr.bf16.mxu1 %v2038_v1  ;;  %v233_v19 = vpop.permute.xlu0 %232 }
  0x79   :  { %1679 = vmatmul.mubr.msk.f32.vlgmr.msra.gmra.mrb[2].mxu0 %vm77_vm1, %v233_v19 }
  0x7a   :  { %1701 = vmatpush3.msra.mxu0 %v2100_v8  ;;  %1702 = vmatprep.mubr.msk.f32.mxu0 %vm2041_vm0, %v2039_v4  ;;  %v393_v34 = vpop.permute.xlu1 %392 }
  0x7b   :  { %1880 = vmatpush3.bf16.msra.mxu1 %v2110_v10  ;;  %1724 = vmatprep.subr.mxu0 %v2039_v4 }
  0x7c   :  { %1881 = vmatprep.subr.bf16.mxu1 %v2038_v1  ;;  %v708_v42 = vpop.permute.xlu0 %707 }
  0x7d   :  { %1703 = vmatmul.mubr.msk.f32.vlgmr.msra.gmra.mrb[4].mxu0 %vm77_vm1, %v393_v34 }
  0x7e   :  { %1725 = vmatpush3.msra.mxu0 %v2100_v8  ;;  %1726 = vmatprep.mubr.msk.f32.mxu0 %vm2041_vm0, %v2039_v4  ;;  %v549_v40 = vpop.permute.xlu1 %548 }
  0x7f   :  { %1883 = vmatpush3.bf16.msra.mxu1 %v2128_v13  ;;  %1899 = vmatprep.subr.bf16.mxu0 %v2038_v1 }
  0x80   :  { %1884 = vmatprep.subr.bf16.mxu1 %v2038_v1  ;;  %v1021_v45 = vpop.permute.xlu0 %1020 }
  0x81   :  { %1727 = vmatmul.mubr.msk.f32.vlgmr.msra.gmra.mrb[6].mxu0 %vm77_vm1, %v549_v40  ;;  %v27_v40 = vld [vmem:[%s2495_s2 + $0x50] sm:$0xff] }
  0x82   :  { %1901 = vmatpush3.bf16.msra.mxu0 %v2087_v5  ;;  %1745 = vmatprep.mubr.msk.f32.mxu0 %vm2041_vm0, %v2039_v4  ;;  %v863_v62 = vpop.permute.xlu1 %862 }
  0x83   :  { %1886 = vmatpush3.bf16.msra.mxu1 %v2139_v16  ;;  %1902 = vmatprep.subr.bf16.mxu0 %v2038_v1 }
  0x84   :  { %1887 = vmatprep.subr.bf16.mxu1 %v2038_v1 }
  0x86   :  { %1904 = vmatpush3.bf16.msra.mxu0 %v2110_v10  ;;  %v1176_v19 = vpop.permute.xlu1 %1175 }
  0x87   :  { %1905 = vmatprep.subr.bf16.mxu0 %v2038_v1 }
  0x8a   :  { %1907 = vmatpush3.bf16.msra.mxu0 %v2128_v13 }
  0x8b   :  { %1908 = vmatprep.subr.bf16.mxu0 %v2038_v1 }
  0x8e   :  { %1910 = vmatpush3.bf16.msra.mxu0 %v2139_v16 }
  0x8f   :  { %1772 = vmatprep.subr.mxu0 %v2039_v4 }
  0xd8   :  { %v147_v20 = vpop.f32.mrb[0].mxu0 }
  0xd9   :  { %v1656_v21 = vpop.f32.mrb[1].mxu0  ;;  %v151_v23 = vsel %vm75_vm2, %v147_v20, 0.0 }
  0xda   :  { %v152_v24 = vadd.f32 %v2165_v22, %v151_v23 }
 0x149   :  { %v223_v25 = vpop.f32.mrb[0].mxu1 }
 0x14a   :  { %v224_v26 = vadd.f32 %v223_v25, %v152_v24  ;;  %v1675_v27 = vpop.f32.mrb[1].mxu1 }
 0x14c   :  { %2016 = vtanh.f32 %v224_v26  ;;  %v302_v32 = vpop.f32.mrb[2].mxu0 }
 0x14d   :  { %v1680_v33 = vpop.f32.mrb[3].mxu0  ;;  %v306_v35 = vsel %vm75_vm2, %v302_v32, 0.0 }
 0x14e   :  { %v307_v36 = vadd.f32 %v2165_v22, %v306_v35 }
 0x150   :  { %v462_v43 = vpop.f32.mrb[4].mxu0 }
 0x151   :  { %v1704_v44 = vpop.f32.mrb[5].mxu0  ;;  %v466_v49 = vsel %vm75_vm2, %v462_v43, 0.0  ;;  %v45_v43 = vld [vmem:[%s2495_s2 + $0xe0] sm:$0xff] }
 0x152   :  { %v467_v50 = vadd.f32 %v2165_v22, %v466_v49  ;;  %v46_v44 = vld [vmem:[%s2495_s2 + $0xe8] sm:$0xff]  ;;  %v47_v49 = vld [vmem:[%s2495_s2 + $0xf0] sm:$0xff] }
 0x154   :  { %v618_v47 = vpop.f32.mrb[6].mxu0 }
 0x155   :  { %v1728_v48 = vpop.f32.mrb[7].mxu0  ;;  %v622_v55 = vsel %vm75_vm2, %v618_v47, 0.0  ;;  %v29_v47 = vld [vmem:[%s2495_s2 + $0x60] sm:$0xff] }
 0x156   :  { %v2017_v30 = vpop.eup %2016  ;;  %v623_v56 = vadd.f32 %v2165_v22, %v622_v55  ;;  %v30_v48 = vld [vmem:[%s2495_s2 + $0x68] sm:$0xff]  ;;  %v32_v55 = vld [vmem:[%s2495_s2 + $0x78] sm:$0xff] }
 0x157   :  { %v229_v31 = vsel %vm228_vm4, %v2017_v30, %v76_v18 }
 0x158   :  { %1698 = vmatmul.mubr.msk.f32.vlgmr.msra.gmra.mrb[2].mxu1 %vm153_vm3, %v229_v31  ;;  %231 = vst.msk [vmem:[%s2497_s4] sm:$0xf] %vm230_vm5, %v229_v31 }
 0x159   :  { %1889 = vmatpush3.bf16.msra.mxu1 %v2087_v5  ;;  %1721 = vmatprep.mubr.msk.f32.mxu1 %vm2041_vm0, %v2039_v4 }
 0x15a   :  { %1890 = vmatprep.subr.bf16.mxu1 %v2038_v1 }
 0x15d   :  { %1892 = vmatpush3.bf16.msra.mxu1 %v2110_v10 }
 0x15e   :  { %1893 = vmatprep.subr.bf16.mxu1 %v2038_v1 }
 0x161   :  { %1895 = vmatpush3.bf16.msra.mxu1 %v2128_v13 }
 0x162   :  { %1896 = vmatprep.subr.bf16.mxu1 %v2038_v1 }
 0x165   :  { %1898 = vmatpush3.bf16.msra.mxu1 %v2139_v16 }
 0x166   :  { %1748 = vmatprep.subr.mxu1 %v2039_v4 }
 0x22b   :  { %v377_v37 = vpop.f32.mrb[2].mxu1 }
 0x22c   :  { %v378_v38 = vadd.f32 %v377_v37, %v307_v36  ;;  %v1699_v39 = vpop.f32.mrb[3].mxu1 }
 0x22d   :  { %v44_v39 = vld [vmem:[%s2495_s2 + $0xd8] sm:$0xff] }
 0x22e   :  { %2018 = vtanh.f32 %v378_v38  ;;  %v43_v38 = vld [vmem:[%s2495_s2 + $0xd0] sm:$0xff] }
 0x238   :  { %v2204_v41 = vpop.eup %2018 }
 0x239   :  { %388 = vrot.lane.b32.xlu0 %v2204_v41, %s2044_s16  ;;  %1722 = vmatmul.mubr.msk.f32.vlgmr.msra.gmra.mrb[4].mxu1 %vm153_vm3, %v2204_v41 }
 0x23a   :  { %1749 = vmatpush3.msra.mxu1 %v2100_v8  ;;  %1750 = vmatprep.mubr.msk.f32.mxu1 %vm2041_vm0, %v2039_v4 }
 0x23b   :  { %1911 = vmatprep.subr.bf16.mxu1 %v2038_v1 }
 0x23d   :  { %1751 = vmatmul.mubr.msk.f32.vlgmr.msra.gmra.mrb[6].mxu1 %vm77_vm1, %v708_v42  ;;  %v28_v42 = vld [vmem:[%s2495_s2 + $0x58] sm:$0xff] }
 0x23e   :  { %1913 = vmatpush3.bf16.msra.mxu1 %v2087_v5  ;;  %1769 = vmatprep.mubr.msk.f32.mxu1 %vm2041_vm0, %v2039_v4 }
 0x23f   :  { %1914 = vmatprep.subr.bf16.mxu1 %v2038_v1 }
 0x242   :  { %1916 = vmatpush3.bf16.msra.mxu1 %v2110_v10 }
 0x243   :  { %1917 = vmatprep.subr.bf16.mxu1 %v2038_v1 }
 0x246   :  { %1919 = vmatpush3.bf16.msra.mxu1 %v2128_v13 }
 0x247   :  { %1920 = vmatprep.subr.bf16.mxu1 %v2038_v1 }
 0x24a   :  { %1922 = vmatpush3.bf16.msra.mxu1 %v2139_v16 }
 0x24b   :  { %1796 = vmatprep.subr.mxu1 %v2039_v4 }
 0x2ab   :  { %v389_v46 = vpop.permute.xlu0 %388 }
 0x2ac   :  { %391 = vst.msk [vmem:[%s2497_s4 + $0x8] sm:$0xf] %vm230_vm5, %v389_v46  ;;  %v1975_v46 = vpack.c.bf16 %v46_v44, %v45_v43 }
 0x30c   :  { %v536_v51 = vpop.f32.mrb[4].mxu1 }
 0x30d   :  { %v537_v52 = vadd.f32 %v536_v51, %v467_v50  ;;  %v1723_v53 = vpop.f32.mrb[5].mxu1  ;;  %v48_v50 = vld [vmem:[%s2495_s2 + $0xf8] sm:$0xff]  ;;  %v1977_v51 = vpack.c.bf16 %v30_v48, %v29_v47 }
 0x30e   :  { %v1979_v53 = vpack.c.bf16 %v48_v50, %v47_v49 }
 0x30f   :  { %2020 = vtanh.f32 %v537_v52 }
 0x310   :  { %v777_v60 = vpop.f32.mrb[6].mxu1 }
 0x311   :  { %v1752_v61 = vpop.f32.mrb[7].mxu1  ;;  %v781_v2 = vsel %vm75_vm2, %v777_v60, 0.0  ;;  %v33_v60 = vld [vmem:[%s2495_s2 + $0x80] sm:$0xff] }
 0x312   :  { %v782_v3 = vadd.f32 %v2165_v22, %v781_v2  ;;  %v34_v61 = vld [vmem:[%s2495_s2 + $0x88] sm:$0xff] }
 0x319   :  { %v2021_v54 = vpop.eup %2020 }
 0x31a   :  { %1746 = vmatmul.mubr.msk.f32.vlgmr.msra.gmra.mrb[8].mxu0 %vm153_vm3, %v2021_v54  ;;  %547 = vst.msk [vmem:[%s2497_s4 + $0x8] sm:$0xf] %vm386_vm6, %v2021_v54 }
 0x31b   :  { %1773 = vmatpush3.msra.mxu0 %v2100_v8  ;;  %1774 = vmatprep.mubr.msk.f32.mxu0 %vm2041_vm0, %v2039_v4 }
 0x31c   :  { %1923 = vmatprep.subr.bf16.mxu0 %v2038_v1 }
 0x31e   :  { %1775 = vmatmul.mubr.msk.f32.vlgmr.msra.gmra.mrb[10].mxu0 %vm77_vm1, %v863_v62  ;;  %v51_v62 = vld [vmem:[%s2495_s2 + $0x110] sm:$0xff] }
 0x31f   :  { %1925 = vmatpush3.bf16.msra.mxu0 %v2087_v5  ;;  %1793 = vmatprep.mubr.msk.f32.mxu0 %vm2041_vm0, %v2039_v4 }
 0x320   :  { %1926 = vmatprep.subr.bf16.mxu0 %v2038_v1 }
 0x323   :  { %1928 = vmatpush3.bf16.msra.mxu0 %v2110_v10 }
 0x324   :  { %1929 = vmatprep.subr.bf16.mxu0 %v2038_v1 }
 0x327   :  { %1931 = vmatpush3.bf16.msra.mxu0 %v2128_v13 }
 0x328   :  { %1932 = vmatprep.subr.bf16.mxu0 %v2038_v1 }
 0x32b   :  { %1934 = vmatpush3.bf16.msra.mxu0 %v2139_v16 }
 0x32c   :  { %1820 = vmatprep.subr.mxu0 %v2039_v4 }
 0x3ed   :  { %v692_v57 = vpop.f32.mrb[8].mxu0 }
 0x3ee   :  { %v693_v58 = vadd.f32 %v692_v57, %v623_v56  ;;  %v1747_v59 = vpop.f32.mrb[9].mxu0  ;;  %v49_v56 = vld [vmem:[%s2495_s2 + $0x100] sm:$0xff]  ;;  %v50_v57 = vld [vmem:[%s2495_s2 + $0x108] sm:$0xff] }
 0x3ef   :  { %v1983_v59 = vpack.c.bf16 %v50_v57, %v49_v56 }
 0x3f0   :  { %2022 = vtanh.f32 %v693_v58 }
 0x3f1   :  { %v932_v14 = vpop.f32.mrb[10].mxu0 }
 0x3f2   :  { %v1776_v15 = vpop.f32.mrb[11].mxu0  ;;  %v936_v20 = vsel %vm75_vm2, %v932_v14, 0.0 }
 0x3f3   :  { %v937_v21 = vadd.f32 %v2165_v22, %v936_v20  ;;  %v37_v15 = vld [vmem:[%s2495_s2 + $0xa0] sm:$0xff]  ;;  %v55_v20 = vld [vmem:[%s2495_s2 + $0x130] sm:$0xff] }
 0x3fa   :  { %v2023_v63 = vpop.eup %2022 }
 0x3fb   :  { %703 = vrot.lane.b32.xlu0 %v2023_v63, %s2040_s21  ;;  %1770 = vmatmul.mubr.msk.f32.vlgmr.msra.gmra.mrb[8].mxu1 %vm153_vm3, %v2023_v63 }
 0x3fc   :  { %1797 = vmatpush3.msra.mxu1 %v2100_v8  ;;  %1798 = vmatprep.mubr.msk.f32.mxu1 %vm2041_vm0, %v2039_v4 }
 0x3fd   :  { %1935 = vmatprep.subr.bf16.mxu1 %v2038_v1 }
 0x3ff   :  { %1799 = vmatmul.mubr.msk.f32.vlgmr.msra.gmra.mrb[10].mxu1 %vm77_vm1, %v1021_v45  ;;  %v1973_v45 = vpack.c.bf16 %v28_v42, %v27_v40 }
 0x400   :  { %1937 = vmatpush3.bf16.msra.mxu1 %v2087_v5  ;;  %1817 = vmatprep.mubr.msk.f32.mxu1 %vm2041_vm0, %v2039_v4 }
 0x401   :  { %1938 = vmatprep.subr.bf16.mxu1 %v2038_v1 }
 0x404   :  { %1940 = vmatpush3.bf16.msra.mxu1 %v2110_v10 }
 0x405   :  { %1941 = vmatprep.subr.bf16.mxu1 %v2038_v1 }
 0x408   :  { %1943 = vmatpush3.bf16.msra.mxu1 %v2128_v13 }
 0x409   :  { %1944 = vmatprep.subr.bf16.mxu1 %v2038_v1 }
 0x40c   :  { %1946 = vmatpush3.bf16.msra.mxu1 %v2139_v16 }
 0x40d   :  { %1959 = vmatprep.subr.bf16.mxu1 %v2038_v1 }
 0x46d   :  { %v704_v0 = vpop.permute.xlu0 %703 }
 0x46e   :  { %706 = vst.msk [vmem:[%s2497_s4 + $0x8] sm:$0xf] %vm545_vm7, %v704_v0  ;;  %v1985_v0 = vpack.c.bf16 %v34_v61, %v33_v60 }
 0x4ce   :  { %v851_v6 = vpop.f32.mrb[8].mxu1 }
 0x4cf   :  { %v852_v7 = vadd.f32 %v851_v6, %v782_v3  ;;  %v1771_v11 = vpop.f32.mrb[9].mxu1  ;;  %v35_v3 = vld [vmem:[%s2495_s2 + $0x90] sm:$0xff]  ;;  %v36_v6 = vld [vmem:[%s2495_s2 + $0x98] sm:$0xff] }
 0x4d0   :  { %v54_v11 = vld [vmem:[%s2495_s2 + $0x128] sm:$0xff] }
 0x4d1   :  { %2024 = vtanh.f32 %v852_v7  ;;  %v53_v7 = vld [vmem:[%s2495_s2 + $0x120] sm:$0xff] }
 0x4d2   :  { %v1090_v26 = vpop.f32.mrb[10].mxu1  ;;  %v1991_v14 = vpack.c.bf16 %v54_v11, %v53_v7 }
 0x4d3   :  { %v1800_v27 = vpop.f32.mrb[11].mxu1  ;;  %v1094_v30 = vsel %vm75_vm2, %v1090_v26, 0.0  ;;  %v57_v26 = vld [vmem:[%s2495_s2 + $0x140] sm:$0xff] }
 0x4d4   :  { %v58_v27 = vld [vmem:[%s2495_s2 + $0x148] sm:$0xff] }
 0x4db   :  { %v2025_v12 = vpop.eup %2024 }
 0x4dc   :  { %856 = vst.msk [vmem:[%s2497_s4 + $0x4] sm:$0xf] %vm230_vm5, %v2025_v12  ;;  %858 = vrot.lane.b32.xlu0 %v2025_v12, %s2048_s28  ;;  %1794 = vmatmul.mubr.msk.f32.vlgmr.msra.gmra.mrb[12].mxu0 %vm153_vm3, %v2025_v12  ;;  %v1989_v12 = vpack.c.bf16 %v36_v6, %v35_v3 }
 0x4dd   :  { %1821 = vmatpush3.msra.mxu0 %v2100_v8  ;;  %1822 = vmatprep.mubr.msk.f32.mxu0 %vm2041_vm0, %v2039_v4 }
 0x4de   :  { %1947 = vmatprep.subr.bf16.mxu0 %v2038_v1 }
 0x4e0   :  { %383 = vrot.lane.b32.xlu0 %v2204_v41, %s2040_s21  ;;  %1823 = vmatmul.mubr.msk.f32.vlgmr.msra.gmra.mrb[14].mxu0 %vm77_vm1, %v1176_v19  ;;  %v1971_v41 = vpack.c.bf16 %v44_v39, %v43_v38 }
 0x4e1   :  { %1949 = vmatpush3.bf16.msra.mxu0 %v2087_v5  ;;  %1841 = vmatprep.mubr.msk.f32.mxu0 %vm2041_vm0, %v2039_v4 }
 0x4e2   :  { %1950 = vmatprep.subr.bf16.mxu0 %v2038_v1 }
 0x4e4   :  { %542 = vrot.lane.b32.xlu0 %v2021_v54, %s2048_s28  ;;  %v31_v54 = vld [vmem:[%s2495_s2 + $0x70] sm:$0xff] }
 0x4e5   :  { %1952 = vmatpush3.bf16.msra.mxu0 %v2110_v10  ;;  %v1981_v58 = vpack.c.bf16 %v32_v55, %v31_v54 }
 0x4e6   :  { %1953 = vmatprep.subr.bf16.mxu0 %v2038_v1 }
 0x4e8   :  { %698 = vrot.lane.b32.xlu0 %v2023_v63, %s2044_s16  ;;  %v52_v63 = vld [vmem:[%s2495_s2 + $0x118] sm:$0xff] }
 0x4e9   :  { %1955 = vmatpush3.bf16.msra.mxu0 %v2128_v13  ;;  %v1987_v2 = vpack.c.bf16 %v52_v63, %v51_v62 }
 0x4ea   :  { %1956 = vmatprep.subr.bf16.mxu0 %v2038_v1 }
 0x4ed   :  { %1958 = vmatpush3.bf16.msra.mxu0 %v2139_v16 }
 0x4ee   :  { %1972 = vmatprep.subr.bf16.mxu0 %v1971_v41 }
 0x54e   :  { %v859_v17 = vpop.permute.xlu0 %858 }
 0x54f   :  { %861 = vst.msk [vmem:[%s2497_s4 + $0x8] sm:$0xf] %vm701_vm8, %v859_v17  ;;  %v38_v17 = vld [vmem:[%s2495_s2 + $0xa8] sm:$0xff] }
 0x552   :  { %v384_v8 = vpop.permute.xlu0 %383 }
 0x553   :  { %387 = vst.msk [vmem:[%s2497_s4] sm:$0xf] %vm386_vm6, %v384_v8  ;;  %v1993_v8 = vpack.c.bf16 %v38_v17, %v37_v15 }
 0x556   :  { %v543_v18 = vpop.permute.xlu0 %542 }
 0x557   :  { %546 = vst.msk [vmem:[%s2497_s4] sm:$0xf] %vm545_vm7, %v543_v18 }
 0x55a   :  { %v699_v9 = vpop.permute.xlu0 %698 }
 0x55b   :  { %702 = vst.msk [vmem:[%s2497_s4] sm:$0xf] %vm701_vm8, %v699_v9 }
 0x5af   :  { %v1006_v23 = vpop.f32.mrb[12].mxu0 }
 0x5b0   :  { %v1007_v24 = vadd.f32 %v1006_v23, %v937_v21  ;;  %v1795_v25 = vpop.f32.mrb[13].mxu0  ;;  %v56_v21 = vld [vmem:[%s2495_s2 + $0x138] sm:$0xff] }
 0x5b1   :  { %v1995_v23 = vpack.c.bf16 %v56_v21, %v55_v20  ;;  %v40_v25 = vld [vmem:[%s2495_s2 + $0xb8] sm:$0xff] }
 0x5b2   :  { %2026 = vtanh.f32 %v1007_v24  ;;  %v39_v24 = vld [vmem:[%s2495_s2 + $0xb0] sm:$0xff] }
 0x5bc   :  { %v2322_v28 = vpop.eup %2026 }
 0x5bd   :  { %1016 = vrot.lane.b32.xlu1 %v2322_v28, %s2044_s16  ;;  %1818 = vmatmul.mubr.msk.f32.vlgmr.msra.gmra.mrb[12].mxu1 %vm153_vm3, %v2322_v28 }
 0x5be   :  { %1961 = vmatpush3.bf16.msra.mxu1 %v2087_v5  ;;  %1860 = vmatprep.mubr.msk.f32.mxu1 %vm2041_vm0, %v2039_v4  ;;  %v1245_v5 = vpop.f32.mrb[14].mxu0 }
 0x5bf   :  { %1962 = vmatprep.subr.bf16.mxu1 %v2038_v1  ;;  %v1824_v4 = vpop.f32.mrb[15].mxu0 }
 0x5c0   :  { %v42_v4 = vld [vmem:[%s2495_s2 + $0xc8] sm:$0xff] }
 0x5c2   :  { %1964 = vmatpush3.bf16.msra.mxu1 %v2110_v10  ;;  %v1095_v10 = vadd.f32 %v2165_v22, %v1094_v30 }
 0x5c3   :  { %1965 = vmatprep.subr.bf16.mxu1 %v2038_v1 }
 0x5c6   :  { %1967 = vmatpush3.bf16.msra.mxu1 %v2128_v13 }
 0x5c7   :  { %1968 = vmatprep.subr.bf16.mxu1 %v2038_v1  ;;  %v1249_v1 = vsel %vm75_vm2, %v1245_v5, 0.0  ;;  %v41_v5 = vld [vmem:[%s2495_s2 + $0xc0] sm:$0xff] }
 0x5c8   :  { %v2001_v30 = vpack.c.bf16 %v42_v4, %v41_v5 }
 0x5ca   :  { %1970 = vmatpush3.bf16.msra.mxu1 %v2139_v16  ;;  %v1250_v16 = vadd.f32 %v2165_v22, %v1249_v1 }
 0x62f   :  { %v1017_v29 = vpop.permute.xlu1 %1016 }
 0x630   :  { %1019 = vst.msk [vmem:[%s2497_s4 + $0xc] sm:$0xf] %vm230_vm5, %v1017_v29  ;;  %v1999_v29 = vpack.c.bf16 %v58_v27, %v57_v26 }
 0x690   :  { %v1164_v31 = vpop.f32.mrb[12].mxu1 }
 0x691   :  { %v1165_v32 = vadd.f32 %v1164_v31, %v1095_v10  ;;  %v1819_v33 = vpop.f32.mrb[13].mxu1 }
 0x693   :  { %2028 = vtanh.f32 %v1165_v32 }
 0x69d   :  { %v2343_v13 = vpop.eup %2028 }
 0x69e   :  { %1174 = vst.msk [vmem:[%s2497_s4 + $0xc] sm:$0xf] %vm386_vm6, %v2343_v13  ;;  %1842 = vmatmul.mubr.msk.f32.vlgmr.msra.gmra.mrb[16].mxu0 %vm153_vm3, %v2343_v13 }
 0x69f   :  { %1974 = vmatpush3.bf16.msra.mxu0 %v1973_v45 }
 0x6a0   :  { %1976 = vmatprep.subr.bf16.mxu0 %v1975_v46 }
 0x6a3   :  { %1978 = vmatpush3.bf16.msra.mxu0 %v1977_v51 }
 0x6a4   :  { %1980 = vmatprep.subr.bf16.mxu0 %v1979_v53 }
 0x6a7   :  { %1982 = vmatpush3.bf16.msra.mxu0 %v1981_v58 }
 0x6a8   :  { %1984 = vmatprep.subr.bf16.mxu0 %v1983_v59 }
 0x6ab   :  { %1986 = vmatpush3.bf16.msra.mxu0 %v1985_v0 }
 0x6ac   :  { %1988 = vmatprep.subr.bf16.mxu0 %v1987_v2 }
 0x6af   :  { %1990 = vmatpush3.bf16.msra.mxu0 %v1989_v12 }
 0x6b0   :  { %1992 = vmatprep.subr.bf16.mxu0 %v1991_v14 }
 0x6b3   :  { %1994 = vmatpush3.bf16.msra.mxu0 %v1993_v8 }
 0x6b4   :  { %1996 = vmatprep.subr.bf16.mxu0 %v1995_v23 }
 0x771   :  { %v1319_v34 = vpop.f32.mrb[16].mxu0 }
 0x772   :  { %v1320_v35 = vadd.f32 %v1319_v34, %v1250_v16  ;;  %v1843_v36 = vpop.f32.mrb[17].mxu0  ;;  %v1501_v34 = vld [vmem:[%s2495_s2 + $0x49] ss:$0 sm:$0xff] }
 0x774   :  { %2030 = vtanh.f32 %v1320_v35 }
 0x77e   :  { %v2354_v37 = vpop.eup %2030 }
 0x77f   :  { %1329 = vrot.lane.b32.xlu1 %v2354_v37, %s2040_s21  ;;  %1861 = vmatmul.mubr.msk.f32.vlgmr.msra.gmra.mrb[14].mxu1 %vm153_vm3, %v2354_v37 }
 0x7f1   :  { %v1330_v52 = vpop.permute.xlu1 %1329 }
 0x7f2   :  { %1332 = vst.msk [vmem:[%s2497_s4 + $0xc] sm:$0xf] %vm545_vm7, %v1330_v52 }
 0x852   :  { %v1401_v18 = vpop.f32.mrb[14].mxu1 }
 0x853   :  { %v1402_v9 = vadd.f32 %v2165_v22, %v1401_v18  ;;  %v1862_v19 = vpop.f32.mrb[15].mxu1  ;;  %v1997_v22 = vpack.c.bf16 %v40_v25, %v39_v24 }
 0x855   :  { %2032 = vtanh.f32 %v1402_v9  ;;  %1998 = vmatpush3.bf16.msra.mxu0 %v1997_v22 }
 0x856   :  { %2000 = vmatprep.subr.bf16.mxu0 %v1999_v29 }
 0x859   :  { %2002 = vmatpush3.bf16.msra.mxu0 %v2001_v30 }
 0x85f   :  { %v2033_v10 = vpop.eup %2032 }
 0x860   :  { %1407 = vrot.lane.b32.xlu1 %v2033_v10, %s2048_s28 }
 0x864   :  { %1012 = vrot.lane.b32.xlu1 %v2322_v28, %s2040_s21 }
 0x868   :  { %1170 = vrot.lane.b32.xlu1 %v2343_v13, %s2048_s28 }
 0x86c   :  { %1325 = vrot.lane.b32.xlu1 %v2354_v37, %s2044_s16 }
 0x8d2   :  { %v1408_v31 = vpop.permute.xlu1 %1407 }
 0x8d3   :  { %1410 = vst.msk [vmem:[%s2497_s4 + $0xc] sm:$0xf] %vm701_vm8, %v1408_v31 }
 0x8d6   :  { %v1013_v32 = vpop.permute.xlu1 %1012 }
 0x8d7   :  { %1015 = vst.msk [vmem:[%s2497_s4 + $0x4] sm:$0xf] %vm386_vm6, %v1013_v32 }
 0x8da   :  { %v1171_v33 = vpop.permute.xlu1 %1170  ;;  %v1411_v28 = vld [vmem:[%s2497_s4 + $0x8] sm:$0xff] }
 0x8db   :  { %1173 = vst.msk [vmem:[%s2497_s4 + $0x4] sm:$0xf] %vm545_vm7, %v1171_v33  ;;  %v1413_v13 = vcombine.high %v1411_v28, %v1411_v28 }
 0x8dd   :  { %1479 = vmatprep.mubr.f32.mxu0 %v1413_v13 }
 0x8de   :  { %v1326_v1 = vpop.permute.xlu1 %1325  ;;  %1480 = vmatmul.mubr.f32.vlgmr.msra.gmra.mrb[18].mxu0 %v1411_v28 }
 0x8df   :  { %1328 = vst.msk [vmem:[%s2497_s4 + $0x4] sm:$0xf] %vm701_vm8, %v1326_v1 }
 0x9b1   :  { %v1649_v16 = vpop.f32.mrb[18].mxu0 }
 0x9b2   :  { %v1650_v35 = vpop.f32.mrb[19].mxu0 }
 0x9b3   :  { %v1651_v36 = vadd.f32 %v1650_v35, %v1649_v16 }
 0x9b5   :  { %v1482_v37 = vadd.f32 %v1651_v36, %v1501_v34 }
 0x9b7   :  { %v1519_v38 = vmul.f32 -1.442695, %v1482_v37 }
 0x9b9   :  { %2034 = vpow2.f32 %v1519_v38 }
 0x9c3   :  { %v2035_v39 = vpop.eup %2034 }
 0x9c4   :  { %v1488_v40 = vadd.f32 1.0, %v2035_v39 }
 0x9c6   :  { %2036 = vrcp.f32 %v1488_v40 }
 0x9d0   :  { %v2037_v41 = vpop.eup %2036 }
 0x9d1   :  { %1491 = vst.msk [vmem:[%s2498_s3] sm:$0xf] %vm230_vm5, %v2037_v41 }

</bundles_post_ra>
